<compile_context>
chip_gen: v7x
topology: tpu7x:2x2x1
jax: 0.10.0
libtpu: 0.0.40
codegen_flags: <defaults>
</compile_context>

<pallas_src>
import jax
import jax.numpy as jnp
from jax.experimental import pallas as pl
from jax.experimental.pallas import tpu as pltpu


def _round_up(x, m):
    return (x + m - 1) // m * m


def _cdiv(a, b):
    return (a + b - 1) // b


def _choose_tile_m(M, tm):
    """Balanced, 16-aligned row tile (avoids a nearly-empty tail tile)."""
    tm = max(16, _round_up(tm, 16))
    if M <= tm:
        return _round_up(M, 16)
    m_tiles = _cdiv(M, tm)
    return _round_up(_cdiv(M, m_tiles), 16)


def _choose_tile_n(dim_out, tn):
    """Balanced, 128-aligned (lane-dense) column tile."""
    tn = max(128, _round_up(tn, 128))
    if dim_out <= tn:
        return _round_up(dim_out, 128)
    n_tiles = _cdiv(dim_out, tn)
    return _round_up(_cdiv(dim_out, n_tiles), 128)


def _glu_kernel(x_ref, w_ref, b_ref, o_ref):
    # x_ref: (TM, dim_in)   w_ref: (dim_in, 2*TN)   b_ref: (1, 2*TN) f32
    # o_ref: (TM, TN)
    tn = o_ref.shape[-1]
    # One fused MXU matmul: value + gate halves share a single LHS stream.
    r = jnp.dot(x_ref[...], w_ref[...], preferred_element_type=jnp.float32)
    r = r + b_ref[...]                 # f32 bias add, once, after the dot
    val = r[:, :tn]                    # TN % 128 == 0 (or full extent) ->
    gate = r[:, tn:]                   # lane-aligned free slices
    # SiLU gate in f32 (sigmoid on EUP, muls on VPU); cast once on store.
    o_ref[...] = (val * (gate * jax.nn.sigmoid(gate))).astype(o_ref.dtype)


def glu_prepare(w, b, dim_out, *, tn=512, compute_dtype=jnp.bfloat16):
    """One-time weight/bias preparation (hoist this out of the forward).

    w: (dim_in, 2*dim_out) = [W_val | W_gate];  b: (2*dim_out,) = [b_val|b_gate]
    Rearranges value/gate columns to be adjacent per output tile, pads dim_out
    up to a multiple of TN, and casts W to the MXU compute dtype.  The result
    dict is meant to be computed once at module init and reused every step, so
    the pallas_call is the only per-forward HBM pass over W.
    """
    dim_in = w.shape[0]
    assert w.shape == (dim_in, 2 * dim_out)
    assert b.shape == (2 * dim_out,)

    TN = _choose_tile_n(dim_out, tn)
    dim_out_p = _round_up(dim_out, TN)
    n_tiles = dim_out_p // TN

    wv, wg = w[:, :dim_out], w[:, dim_out:]
    bv, bg = b[:dim_out], b[dim_out:]
    if dim_out_p != dim_out:
        pad = dim_out_p - dim_out
        wv = jnp.pad(wv, ((0, 0), (0, pad)))
        wg = jnp.pad(wg, ((0, 0), (0, pad)))
        bv = jnp.pad(bv, (0, pad))
        bg = jnp.pad(bg, (0, pad))

    # Per-tile layout:  w_arr[:, j*2TN:(j+1)*2TN] = [W_val tile j | W_gate tile j]
    w_arr = jnp.concatenate(
        [wv.reshape(dim_in, n_tiles, TN), wg.reshape(dim_in, n_tiles, TN)],
        axis=-1,
    ).reshape(dim_in, n_tiles * 2 * TN)
    b_arr = jnp.concatenate(
        [bv.reshape(n_tiles, TN), bg.reshape(n_tiles, TN)], axis=-1
    ).reshape(1, n_tiles * 2 * TN).astype(jnp.float32)

    if compute_dtype is not None:
        w_arr = w_arr.astype(compute_dtype)

    return dict(w_arr=w_arr, b_arr=b_arr, dim_in=dim_in, dim_out=dim_out,
                dim_out_p=dim_out_p, TN=TN, n_tiles=n_tiles,
                compute_dtype=compute_dtype)


def glu_forward_prepared(x, params, *, tm=512, out_dtype=None):
    """GLU forward with pre-prepared weights.  x: (B, N, dim_in)."""
    B, N, dim_in = x.shape
    assert dim_in == params["dim_in"]
    M = B * N

    TN = params["TN"]
    dim_out = params["dim_out"]
    dim_out_p = params["dim_out_p"]
    n_tiles = params["n_tiles"]
    compute_dtype = params["compute_dtype"]

    TM = _choose_tile_m(M, tm)
    M_p = _round_up(M, TM)
    m_tiles = M_p // TM

    x2d = x.reshape(M, dim_in)
    if compute_dtype is not None:
        x2d = x2d.astype(compute_dtype)
    if M_p != M:
        x2d = jnp.pad(x2d, ((0, M_p - M), (0, 0)))

    out_dtype = x.dtype if out_dtype is None else out_dtype

    # --- VMEM budget derived from the actual tile footprint -----------------
    cbytes = jnp.dtype(x2d.dtype).itemsize
    obytes = jnp.dtype(out_dtype).itemsize
    need = (2 * TM * dim_in * cbytes            # x tile, double-buffered
            + 2 * dim_in * 2 * TN * cbytes      # weight tile, double-buffered
            + 2 * 2 * TN * 4                    # bias tile
            + 2 * TM * TN * obytes              # output tile
            + 2 * TM * 2 * TN * 4)              # f32 dot result / epilogue temps
    try:
        vmem_cap = pltpu.get_tpu_info().vmem_capacity_bytes
    except Exception:
        vmem_cap = 64 * 1024 * 1024             # v7x per-TC floor
    vmem_limit = int(min(max(need + (4 << 20), 32 << 20),
                         min(100 << 20, vmem_cap - (8 << 20))))

    # M (axis 1) is the fastest-varying grid axis; weight/bias block indices
    # depend only on the N-tile axis -> weight tile reused across M steps.
    grid = (n_tiles, m_tiles)
    # TODO(synk): add a K grid axis + f32 VMEM accumulator once dim_in is large
    # enough that 2*(dim_in, 2*TN) weight buffers blow VMEM (~4K dim_in on v7x,
    # ~8K on v5e/v6e), and verify on v7x that the grid shards across both TCs
    # (mark the n_tiles axis CORE_PARALLEL if not).
    out2d = pl.pallas_call(
        _glu_kernel,
        out_shape=jax.ShapeDtypeStruct((M_p, dim_out_p), out_dtype),
        grid_spec=pltpu.PrefetchScalarGridSpec(
            num_scalar_prefetch=0,
            grid=grid,
            in_specs=[
                pl.BlockSpec((TM, dim_in), lambda j, i: (i, 0)),
                pl.BlockSpec((dim_in, 2 * TN), lambda j, i: (0, j)),
                pl.BlockSpec((1, 2 * TN), lambda j, i: (0, j)),
            ],
            out_specs=pl.BlockSpec((TM, TN), lambda j, i: (i, j)),
        ),
        compiler_params=pltpu.CompilerParams(
            dimension_semantics=("parallel", "parallel"),
            vmem_limit_bytes=vmem_limit,
        ),
    )(x2d, params["w_arr"], params["b_arr"])

    return out2d[:M, :dim_out].reshape(B, N, dim_out)


def glu_forward(x, w, b, dim_out, *, tm=512, tn=512,
                compute_dtype=jnp.bfloat16, out_dtype=None):
    """Convenience wrapper: prepare + forward (prep should be cached by callers)."""
    params = glu_prepare(w, b, dim_out, tn=tn, compute_dtype=compute_dtype)
    return glu_forward_prepared(x, params, tm=tm, out_dtype=out_dtype)


def _reference(x, w, b, dim_out):
    B, N, dim_in = x.shape
    h = x.reshape(B * N, dim_in) @ w + b
    val, gate = h[:, :dim_out], h[:, dim_out:]
    return (val * jax.nn.silu(gate)).reshape(B, N, dim_out)


if __name__ == "__main__":
    key = jax.random.PRNGKey(0)

    # ---- Test 1: small base shapes, single tile --------------------------
    B, N, dim_in, dim_out = 2, 8, 32, 32
    kx, kw, kb, key = jax.random.split(key, 4)
    bound = 1.0 / (dim_in ** 0.5)   # PyTorch nn.Linear-style init
    w = jax.random.uniform(kw, (dim_in, 2 * dim_out), jnp.float32, -bound, bound)
    b = jax.random.uniform(kb, (2 * dim_out,), jnp.float32, -bound, bound)
    x = jax.random.normal(kx, (B, N, dim_in), jnp.float32)
    ref = _reference(x, w, b, dim_out)

    # f32 MXU path (exact check)
    out = jax.block_until_ready(
        glu_forward(x, w, b, dim_out, compute_dtype=jnp.float32))
    assert out.shape == ref.shape
    assert jnp.allclose(out, ref, atol=1e-5, rtol=1e-5), "f32 mismatch (base)"

    # default bf16 MXU path (f32 accumulation / gating)
    out_bf = jax.block_until_ready(glu_forward(x, w, b, dim_out))
    assert jnp.allclose(out_bf, ref, atol=5e-2, rtol=5e-2), "bf16 mismatch (base)"

    # ---- Test 2: n_tiles > 1, non-divisible dim_out, ragged M -------------
    # Exercises the per-tile [W_val | W_gate] rearrange, padded-column slicing
    # and multi-tile M with a balanced tail tile (tm/tn kept tiny on purpose).
    B2, N2, dim_in2, dim_out2 = 2, 9, 48, 160
    kx2, kw2, kb2, key = jax.random.split(key, 4)
    bound2 = 1.0 / (dim_in2 ** 0.5)
    w2 = jax.random.uniform(kw2, (dim_in2, 2 * dim_out2), jnp.float32, -bound2, bound2)
    b2 = jax.random.uniform(kb2, (2 * dim_out2,), jnp.float32, -bound2, bound2)
    x2 = jax.random.normal(kx2, (B2, N2, dim_in2), jnp.float32)
    ref2 = _reference(x2, w2, b2, dim_out2)

    params2 = glu_prepare(w2, b2, dim_out2, tn=128, compute_dtype=jnp.float32)
    out2 = jax.block_until_ready(glu_forward_prepared(x2, params2, tm=16))
    assert out2.shape == ref2.shape
    assert jnp.allclose(out2, ref2, atol=1e-5, rtol=1e-5), "f32 mismatch (multi-tile)"

    params2b = glu_prepare(w2, b2, dim_out2, tn=128, compute_dtype=jnp.bfloat16)
    out2b = jax.block_until_ready(
        glu_forward_prepared(x2, params2b, tm=16, out_dtype=jnp.bfloat16))
    assert out2b.dtype == jnp.bfloat16
    assert jnp.allclose(out2b.astype(jnp.float32), ref2, atol=5e-2, rtol=5e-2), \
        "bf16 mismatch (multi-tile)"

    print("KERNEL_OK")
</pallas_src>

<mosaic_0001>
module attributes {stable_mosaic.version = 11 : i64} {
  func.func @_glu_kernel(%arg0: i32, %arg1: i32, %arg2: memref<16x32xf32, #tpu.memory_space<vmem>>, %arg3: memref<32x256xf32, #tpu.memory_space<vmem>>, %arg4: memref<1x256xf32, #tpu.memory_space<vmem>>, %arg5: memref<16x128xf32, #tpu.memory_space<vmem>>) attributes {dimension_semantics = [#tpu.dimension_semantics<parallel>, #tpu.dimension_semantics<parallel>], iteration_bounds = array<i64: 1, 1>, scalar_prefetch = 0 : i64, scratch_operands = 0 : i64, tpu.core_type = #tpu.core_type<tc>, window_params = [{transform_indices = @transform_0, window_bounds = array<i64: 16, 32>}, {transform_indices = @transform_1, window_bounds = array<i64: 32, 256>}, {transform_indices = @transform_2, window_bounds = array<i64: 1, 256>}, {transform_indices = @transform_3, window_bounds = array<i64: 16, 128>}]} {
    %c0 = arith.constant 0 : index
    %c0_0 = arith.constant 0 : index
    %0 = vector.load %arg2[%c0, %c0_0] : memref<16x32xf32, #tpu.memory_space<vmem>>, vector<16x32xf32>
    %c0_1 = arith.constant 0 : index
    %c0_2 = arith.constant 0 : index
    %1 = vector.load %arg3[%c0_1, %c0_2] : memref<32x256xf32, #tpu.memory_space<vmem>>, vector<32x256xf32>
    %cst = arith.constant dense<0.000000e+00> : vector<16x256xf32>
    %2 = tpu.matmul %0, %1, %cst {dimension_numbers = #tpu.dot_dimension_numbers<[1], [0], [0], [1], [0, 0, 1, 1], [], []>} : vector<16x32xf32>, vector<32x256xf32>, vector<16x256xf32> -> vector<16x256xf32>
    %c0_3 = arith.constant 0 : index
    %c0_4 = arith.constant 0 : index
    %3 = vector.load %arg4[%c0_3, %c0_4] : memref<1x256xf32, #tpu.memory_space<vmem>>, vector<1x256xf32>
    %4 = vector.broadcast %3 : vector<1x256xf32> to vector<16x256xf32>
    %5 = arith.addf %2, %4 : vector<16x256xf32>
    %6 = vector.extract_strided_slice %5 {offsets = [0, 0], sizes = [16, 128], strides = [1, 1]} : vector<16x256xf32> to vector<16x128xf32>
    %7 = vector.extract_strided_slice %5 {offsets = [0, 128], sizes = [16, 128], strides = [1, 1]} : vector<16x256xf32> to vector<16x128xf32>
    %8 = arith.negf %7 : vector<16x128xf32>
    %9 = math.exp %8 : vector<16x128xf32>
    %cst_5 = arith.constant 1.000000e+00 : f32
    %10 = vector.broadcast %cst_5 : f32 to vector<16x128xf32>
    %11 = arith.addf %10, %9 : vector<16x128xf32>
    %12 = arith.divf %10, %11 : vector<16x128xf32>
    %13 = arith.mulf %7, %12 : vector<16x128xf32>
    %14 = arith.mulf %6, %13 : vector<16x128xf32>
    %c0_6 = arith.constant 0 : index
    %c0_7 = arith.constant 0 : index
    %15 = vector.load %arg5[%c0_6, %c0_7] : memref<16x128xf32, #tpu.memory_space<vmem>>, vector<16x128xf32>
    tpu.vector_store %arg5[%c0_6, %c0_7], %14 {strides = array<i32>} : memref<16x128xf32, #tpu.memory_space<vmem>>, vector<16x128xf32>,
    return
  }
  func.func @transform_0(%arg0: i32, %arg1: i32) -> (i32, i32) {
    %c0_i32 = arith.constant 0 : i32
    %c0_i32_0 = arith.constant 0 : i32
    return %arg1, %c0_i32 : i32, i32
  }
  func.func @transform_1(%arg0: i32, %arg1: i32) -> (i32, i32) {
    %c0_i32 = arith.constant 0 : i32
    %c0_i32_0 = arith.constant 0 : i32
    return %c0_i32, %arg0 : i32, i32
  }
  func.func @transform_2(%arg0: i32, %arg1: i32) -> (i32, i32) {
    %c0_i32 = arith.constant 0 : i32
    %c0_i32_0 = arith.constant 0 : i32
    return %c0_i32, %arg0 : i32, i32
  }
  func.func @transform_3(%arg0: i32, %arg1: i32) -> (i32, i32) {
    %c0_i32 = arith.constant 0 : i32
    return %arg1, %arg0 : i32, i32
  }
}

</mosaic_0001>

<bundles_post_ra>
// kernel: tpu_custom_call.1
= control target key start
LH: loop header
LB: loop body
LE: loop exit
PB: predicated region body
PF: predicated region fallthrough
CT: control target
= control target key end

     0   :  { %8 = vsyncpa [#allocation3], 0  ;;  %s362_s0 = inlined_call_operand.hbm [shape: f32[16,32], index: 0, kind: input, shape index: {}]   ;;  %s363_s1 = inlined_call_operand.hbm [shape: f32[32,256], index: 1, kind: input, shape index: {}]   ;;  %s364_s2 = inlined_call_operand.vmem [shape: f32[1,256], index: 2, kind: input, shape index: {}]   ;;  %s365_s3 = inlined_call_operand.hbm [shape: f32[16,128], index: 3, kind: output, shape index: {}]  }
   0x1   :  { %9 = vsyncpa [#allocation6], 0 }
   0x2   :  { %10 = vsyncpa [#allocation4], 0  ;;  %s289_s12 = smov [#allocation2]   ;;  %s217_s16 = scalar_lea.hbm %s362_s0, 256 }
   0x3   :  { %s16_s13 = sshll.u32 %s289_s12, 4  ;;  %p218_p0 = scmp.ne.s32.totalorder %s362_s0, %s217_s16  ;;  %s17_s13 = int_to_ptr.vmem [resolvable:$true] %s16_s13 }
   0x4   :  { %p221_p1 = scmp.lt.u32.totalorder %s217_s16, %s362_s0 }
   0x6   :  { %p223_p2 = pnand %p221_p1, %p218_p0 }
   0x8   :  { %226 = shalt.err (!%p223_p2)
}
   0x9   :  { %s227_s21 = scalar_lea.vmem %s17_s13, 256  ;;  %p232_p4 = scmp.lt.s32.totalorder %s17_s13, %s17_s13 }
   0xa   :  { %p228_p3 = scmp.ne.s32.totalorder %s17_s13, %s227_s21  ;;  %p233_p5 = scmp.lt.s32.totalorder %s227_s21, %s227_s21 }
   0xc   :  { %p234_p6 = por %p233_p5, %p232_p4 }
   0xe   :  { %p235_p7 = pnand %p234_p6, %p228_p3 }
  0x10   :  { %238 = shalt.err (!%p235_p7)
}
  0x11   :  { %s290_s22 = smov 128   ;;  %s291_s23 = smov 8  }
  0x12   :  { %22 = dma.hbm_to_vmem [thread:$0]  %s362_s0, 256, %s17_s13, [#allocation3], %s290_s22, %s290_s22, %s291_s23  }
  0x13   :  { %s292_s26 = smov [#allocation5]   ;;  %s239_s30 = scalar_lea.hbm %s363_s1, 1024 }
  0x14   :  { %s28_s27 = sshll.u32 %s292_s26, 4  ;;  %p240_p8 = scmp.ne.s32.totalorder %s363_s1, %s239_s30  ;;  %s29_s27 = int_to_ptr.vmem [resolvable:$true] %s28_s27 }
  0x15   :  { %p243_p9 = scmp.lt.u32.totalorder %s239_s30, %s363_s1 }
  0x17   :  { %p245_p10 = pnand %p243_p9, %p240_p8 }
  0x19   :  { %248 = shalt.err (!%p245_p10)
}
  0x1a   :  { %s249_s8 = scalar_lea.vmem %s29_s27, 1024  ;;  %p254_p12 = scmp.lt.s32.totalorder %s29_s27, %s29_s27 }
  0x1b   :  { %p250_p11 = scmp.ne.s32.totalorder %s29_s27, %s249_s8  ;;  %p255_p13 = scmp.lt.s32.totalorder %s249_s8, %s249_s8 }
  0x1d   :  { %p256_p0 = por %p255_p13, %p254_p12 }
  0x1f   :  { %p257_p1 = pnand %p256_p0, %p250_p11 }
  0x21   :  { %260 = shalt.err (!%p257_p1)
}
  0x22   :  { %s293_s0 = smov 256   ;;  %s294_s9 = smov 16  }
  0x23   :  { %34 = dma.hbm_to_vmem [thread:$0]  %s363_s1, 1024, %s29_s27, [#allocation6], %s293_s0, %s293_s0, %s294_s9  }
  0x24   :  { %283 = dma.done.wait [#allocation3], 256  }
  0x25   :  { %284 = vsyncadd [#allocation3], 4294967040 }
  0x26   :  { %285 = dma.done.wait [#allocation6], 1024  }
  0x27   :  { %286 = vsyncadd [#allocation6], 4294966272  ;;  %v295_v0 = vmov 0.0   ;;  %v46_v1 = vld [vmem:[#allocation5 + $0x8] sm:$0xff]  ;;  %v48_v2 = vld [vmem:[#allocation5 + $0x18] sm:$0xff]  ;;  %vm65_vm0 = vcmask 261120   ;;  %v55_v15 = vlaneseq }
  0x28   :  { %136 = vmatprep.mubr.f32.mxu0 %v295_v0  ;;  %142 = vmatprep.mubr.f32.mxu1 %v295_v0  ;;  %v45_v3 = vld [vmem:[#allocation5] sm:$0xff]  ;;  %v189_v4 = vpack.c.bf16 %v48_v2, %v46_v1  ;;  %v47_v5 = vld [vmem:[#allocation5 + $0x10] sm:$0xff]  ;;  %v50_v6 = vld [vmem:[#allocation5 + $0x28] sm:$0xff] }
  0x29   :  { %v52_v7 = vld [vmem:[#allocation5 + $0x38] sm:$0xff]  ;;  %v191_v8 = vpack.c.bf16 %v47_v5, %v45_v3  ;;  %v49_v10 = vld [vmem:[#allocation5 + $0x20] sm:$0xff]  ;;  %v51_v11 = vld [vmem:[#allocation5 + $0x30] sm:$0xff]  ;;  %v56_v16 = vshrl.u32 %v55_v15, 7 }
  0x2a   :  { %v193_v9 = vpack.c.bf16 %v52_v7, %v50_v6  ;;  %190 = vmatprep.subr.bf16.mxu0 %v189_v4  ;;  %197 = vmatprep.subr.bf16.mxu1 %v189_v4  ;;  %v195_v12 = vpack.c.bf16 %v51_v11, %v49_v10  ;;  %v43_v13 = vld [vmem:[#allocation2] sm:$0xff]  ;;  %v44_v14 = vld [vmem:[#allocation2 + $0x8] sm:$0xff] }
  0x2b   :  { %192 = vmatpush1.bf16.msra.mxu0 %v191_v8  ;;  %199 = vmatpush1.bf16.msra.mxu1 %v191_v8  ;;  %v61_v17 = vsub.s32 1, %v56_v16  ;;  %v53_v18 = vld [vmem:[%s364_s2] sm:$0x3]  ;;  %v57_v32 = vsub.s32 0, %v56_v16  ;;  %s296_s2 = smov [#allocation7]  }
  0x2c   :  { %194 = vmatprep.subr.bf16.mxu0 %v193_v9  ;;  %198 = vmatprep.subr.bf16.mxu1 %v193_v9  ;;  %s172_s13 = sshll.u32 %s296_s2, 4  ;;  %s173_s13 = int_to_ptr.vmem [resolvable:$true] %s172_s13 }
  0x2d   :  { %v62_v19 = vrot.slane %v53_v18, %v61_v17  ;;  %v58_v33 = vrot.slane %v53_v18, %v57_v32  ;;  %s261_s14 = scalar_lea.vmem %s173_s13, 256  ;;  %p266_p3 = scmp.lt.s32.totalorder %s173_s13, %s173_s13 }
  0x2e   :  { %p262_p2 = scmp.ne.s32.totalorder %s173_s13, %s261_s14  ;;  %p267_p4 = scmp.lt.s32.totalorder %s261_s14, %s261_s14 }
  0x2f   :  { %196 = vmatpush1.bf16.msra.mxu0 %v195_v12  ;;  %200 = vmatpush1.bf16.msra.mxu1 %v195_v12 }
  0x30   :  { %p268_p5 = por %p267_p4, %p266_p3 }
  0x32   :  { %185 = vmatmul.mubr.msk.f32.vlgmr.msra.gmra.mrb[0].mxu0 %vm65_vm0, %v43_v13  ;;  %186 = vmatmul.mubr.msk.f32.vlgmr.msra.gmra.mrb[0].mxu1 %vm65_vm0, %v44_v14  ;;  %p269_p6 = pnand %p268_p5, %p262_p2 }
 0x105   :  { %v138_v20 = vpop.f32.mrb[0].mxu0  ;;  %v144_v21 = vpop.f32.mrb[0].mxu1 }
 0x106   :  { %v140_v22 = vpop.f32.mrb[1].mxu0  ;;  %v146_v23 = vpop.f32.mrb[1].mxu1  ;;  %v139_v36 = vadd.f32 %v138_v20, %v58_v33  ;;  %v145_v38 = vadd.f32 %v144_v21, %v58_v33 }
 0x107   :  { %v141_v24 = vadd.f32 %v140_v22, %v62_v19  ;;  %v147_v25 = vadd.f32 %v146_v23, %v62_v19 }
 0x109   :  { %v187_v26 = vmul.f32 -1.442695, %v141_v24  ;;  %v188_v27 = vmul.f32 -1.442695, %v147_v25 }
 0x10b   :  { %209 = vpow2.f32 %v187_v26 }
 0x10c   :  { %211 = vpow2.f32 %v188_v27 }
 0x115   :  { %v210_v28 = vpop.eup %209 }
 0x116   :  { %v212_v29 = vpop.eup %211  ;;  %v155_v30 = vadd.f32 1.0, %v210_v28 }
 0x117   :  { %v156_v31 = vadd.f32 1.0, %v212_v29 }
 0x118   :  { %213 = vrcp.f32 %v155_v30 }
 0x119   :  { %215 = vrcp.f32 %v156_v31 }
 0x122   :  { %v214_v34 = vpop.eup %213 }
 0x123   :  { %v216_v35 = vpop.eup %215  ;;  %v161_v37 = vmul.f32 %v214_v34, %v141_v24 }
 0x124   :  { %v162_v39 = vmul.f32 %v216_v35, %v147_v25 }
 0x125   :  { %v163_v40 = vmul.f32 %v161_v37, %v139_v36 }
 0x126   :  { %v164_v41 = vmul.f32 %v162_v39, %v145_v38 }
 0x127   :  { %165 = vst [vmem:[#allocation7] sm:$0xff] %v163_v40 }
 0x128   :  { %166 = vst [vmem:[#allocation7 + $0x8] sm:$0xff] %v164_v41 }
 0x129   :  { %272 = shalt.err (!%p269_p6)
}
 0x12a   :  { %s273_s17 = scalar_lea.hbm %s365_s3, 256 }
 0x12b   :  { %p274_p7 = scmp.ne.s32.totalorder %s365_s3, %s273_s17  ;;  %p277_p8 = scmp.lt.u32.totalorder %s273_s17, %s365_s3 }
 0x12d   :  { %p279_p9 = pnand %p277_p8, %p274_p7 }
 0x12f   :  { %282 = shalt.err (!%p279_p9)
}
 0x130   :  { %178 = dma.vmem_to_hbm [thread:$0]  %s173_s13, 256, %s365_s3, [#allocation4], %s290_s22, %s290_s22, %s291_s23  }
 0x131   :  { %287 = dma.done.wait [#allocation4], 256  }
 0x132   :  { %288 = vsyncadd [#allocation4], 4294967040 }
 0x133   :  { %182 = vsyncpa [#allocation3], 1 }
 0x134   :  { %183 = vsyncpa [#allocation6], 1 }
 0x135   :  { %184 = vsyncpa [#allocation4], 1 }

</bundles_post_ra>
